<compile_context>
chip_gen: v5e
topology: v5e:2x2
jax: 0.10.0
libtpu: 0.0.40
codegen_flags: <defaults>
</compile_context>

<pallas_src>
import math

import jax
import jax.numpy as jnp
from jax.experimental import pallas as pl
from jax.experimental.pallas import tpu as pltpu


def _transpose_tile_kernel(x_ref, o_ref):
    # x_ref: (TP, TQ) -> o_ref: (TQ, TP). Single on-chip (XLU) tile transpose.
    o_ref[...] = jnp.swapaxes(x_ref[...], 0, 1)


def _transpose_batched_tile_kernel(x_ref, o_ref):
    # x_ref: (TN, TP, TQ) -> o_ref: (TN, TQ, TP). Several batch slices per step.
    o_ref[...] = jnp.swapaxes(x_ref[...], 1, 2)


def _pick_tile(dim, cap=512):
    """Pick a tile size that keeps loads AND stores lane-dense where possible.

    `cap` is a multiple of 128.  If the dim is 128-aligned use a big aligned
    tile; if it is small/ragged use the full extent (always legal); if it is
    large and ragged use `cap` and let Pallas mask the edge blocks.
    """
    if dim % 128 == 0:
        return min(cap, dim)
    if dim <= cap:
        return dim
    return cap


def _transpose_last_two(x3):
    """[N, P, Q] -> [N, Q, P] via a tiled Pallas kernel."""
    N, P, Q = x3.shape
    itemsize = jnp.dtype(x3.dtype).itemsize
    TP = _pick_tile(P)
    TQ = _pick_tile(Q)

    # If one (P, Q) slab fits whole and is small, pack multiple batch slices
    # per grid step so each step moves ~1 MiB (amortize per-step overhead).
    target_block_bytes = 1 << 20
    tile_bytes = TP * TQ * itemsize
    TN = 1
    if TP == P and TQ == Q and tile_bytes < target_block_bytes:
        TN = max(1, min(N, target_block_bytes // max(1, tile_bytes)))

    grid = (pl.cdiv(N, TN), pl.cdiv(P, TP), pl.cdiv(Q, TQ))

    if TN == 1:
        kernel = _transpose_tile_kernel
        in_spec = pl.BlockSpec((None, TP, TQ), lambda n, i, j: (n, i, j))
        out_spec = pl.BlockSpec((None, TQ, TP), lambda n, i, j: (n, j, i))
    else:
        kernel = _transpose_batched_tile_kernel
        in_spec = pl.BlockSpec((TN, TP, TQ), lambda n, i, j: (n, i, j))
        out_spec = pl.BlockSpec((TN, TQ, TP), lambda n, i, j: (n, j, i))

    return pl.pallas_call(
        kernel,
        out_shape=jax.ShapeDtypeStruct((N, Q, P), x3.dtype),
        grid_spec=pltpu.PrefetchScalarGridSpec(
            num_scalar_prefetch=0,
            grid=grid,
            in_specs=[in_spec],
            out_specs=out_spec,
        ),
        compiler_params=pltpu.CompilerParams(
            dimension_semantics=("parallel", "parallel", "parallel")),
    )(x3)


def transpose(x, dim0, dim1, *, contiguous=False):
    """Equivalent of torch `x.transpose(dim0, dim1)`; `.contiguous()` is a no-op."""
    del contiguous  # Pallas/JAX outputs are always dense / materialized.
    ndim = x.ndim
    d0 = dim0 % ndim
    d1 = dim1 % ndim
    if d0 == d1:
        return x
    d0, d1 = min(d0, d1), max(d0, d1)

    if d0 == ndim - 2 and d1 == ndim - 1:
        # Swap of the last two axes (the ViST usage): flatten leading dims into
        # the batch grid axis and run the tiled Pallas transpose.
        lead = x.shape[:d0]
        P, Q = x.shape[d0], x.shape[d1]
        n_lead = math.prod(lead) if lead else 1
        out3 = _transpose_last_two(x.reshape((n_lead, P, Q)))
        return out3.reshape(lead + (Q, P))

    # TODO(synk): a swap that does not touch the last axis is a pure index
    # permutation of whole contiguous rows; left to XLA's copy rather than a
    # tiny-block Pallas gather.
    return jnp.swapaxes(x, d0, d1)


class Transpose:
    """Mirror of the PyTorch module: Transpose(*dims, contiguous=False)."""

    def __init__(self, *dims, contiguous=False):
        assert len(dims) == 2, "Transpose expects exactly two dims"
        self.dims = dims
        self.contiguous = contiguous

    def __call__(self, x):
        return transpose(x, self.dims[0], self.dims[1],
                         contiguous=self.contiguous)


if __name__ == "__main__":
    key = jax.random.PRNGKey(0)
    k1, k2, k3 = jax.random.split(key, 3)

    # Transpose(1, 2) on a small [batch=2, seq=8, hidden=32] tensor
    # (the typical ViST usage; exercises the batched TN > 1 path).
    x = jax.random.normal(k1, (2, 8, 32), jnp.float32)
    y = jax.block_until_ready(Transpose(1, 2, contiguous=True)(x))
    assert y.shape == (2, 32, 8)
    assert jnp.array_equal(y, jnp.swapaxes(x, 1, 2)), "3D transpose mismatch"

    # Transpose(-2, -1) on a 4-D tensor [2, 4, 16, 16]: leading dims flatten
    # into the grid batch axis and are packed into one block.
    x4 = jax.random.normal(k2, (2, 4, 16, 16), jnp.float32)
    y4 = jax.block_until_ready(Transpose(-2, -1)(x4))
    assert y4.shape == (2, 4, 16, 16)
    assert jnp.array_equal(y4, jnp.swapaxes(x4, 2, 3)), "4D transpose mismatch"

    # Ragged / large dims: exercises the per-tile (TN == 1) path with
    # pl.cdiv edge-block masking.
    xr = jax.random.normal(k3, (1, 520, 300), jnp.float32)
    yr = jax.block_until_ready(Transpose(-2, -1)(xr))
    assert yr.shape == (1, 300, 520)
    assert jnp.array_equal(yr, jnp.swapaxes(xr, 1, 2)), "ragged transpose mismatch"

    print("KERNEL_OK")
</pallas_src>

<mosaic_0001>
module attributes {stable_mosaic.version = 11 : i64} {
  func.func @_transpose_batched_tile_kernel(%arg0: i32, %arg1: i32, %arg2: i32, %arg3: memref<2x8x32xf32, #tpu.memory_space<vmem>>, %arg4: memref<2x32x8xf32, #tpu.memory_space<vmem>>) attributes {dimension_semantics = [#tpu.dimension_semantics<parallel>, #tpu.dimension_semantics<parallel>, #tpu.dimension_semantics<parallel>], iteration_bounds = array<i64: 1, 1, 1>, scalar_prefetch = 0 : i64, scratch_operands = 0 : i64, tpu.core_type = #tpu.core_type<tc>, window_params = [{transform_indices = @transform_0, window_bounds = array<i64: 2, 8, 32>}, {transform_indices = @transform_1, window_bounds = array<i64: 2, 32, 8>}]} {
    %c0 = arith.constant 0 : index
    %c0_0 = arith.constant 0 : index
    %c0_1 = arith.constant 0 : index
    %0 = vector.load %arg3[%c0, %c0_0, %c0_1] : memref<2x8x32xf32, #tpu.memory_space<vmem>>, vector<2x8x32xf32>
    %1 = tpu.transpose %0, [0, 2, 1] : vector<2x8x32xf32> -> vector<2x32x8xf32>
    %c0_2 = arith.constant 0 : index
    %c0_3 = arith.constant 0 : index
    %c0_4 = arith.constant 0 : index
    %2 = vector.load %arg4[%c0_2, %c0_3, %c0_4] : memref<2x32x8xf32, #tpu.memory_space<vmem>>, vector<2x32x8xf32>
    tpu.vector_store %arg4[%c0_2, %c0_3, %c0_4], %1 {strides = array<i32>} : memref<2x32x8xf32, #tpu.memory_space<vmem>>, vector<2x32x8xf32>,
    return
  }
  func.func @transform_0(%arg0: i32, %arg1: i32, %arg2: i32) -> (i32, i32, i32) {
    %c0_i32 = arith.constant 0 : i32
    return %arg0, %arg1, %arg2 : i32, i32, i32
  }
  func.func @transform_1(%arg0: i32, %arg1: i32, %arg2: i32) -> (i32, i32, i32) {
    %c0_i32 = arith.constant 0 : i32
    return %arg0, %arg2, %arg1 : i32, i32, i32
  }
}

</mosaic_0001>

<bundles_post_ra>
// kernel: tpu_custom_call.1
= control target key start
LH: loop header
LB: loop body
LE: loop exit
PB: predicated region body
PF: predicated region fallthrough
CT: control target
= control target key end

     0   :  { %6 = vsyncpa [#allocation3], 0  ;;  %s134_s9 = smov [#allocation2]   ;;  %s135_s11 = smov 128   ;;  %s182_s0 = inlined_call_operand.hbm [shape: f32[2,8,32], index: 0, kind: input, shape index: {}]   ;;  %s183_s1 = inlined_call_operand.vmem [shape: f32[2,32,8], index: 1, kind: output, shape index: {}]  }
   0x1   :  { %s11_s8 = sshll.u32 %s182_s0, 4  ;;  %s13_s10 = sshll.u32 %s134_s9, 4  ;;  %s12_s8 = int_to_ptr.hbm [resolvable:$true] %s11_s8  ;;  %s14_s10 = int_to_ptr.vmem [resolvable:$true] %s13_s10 }
   0x2   :  { %s136_s12 = smov 8  }
   0x3   :  { %19 = dma.hbm_to_vmem [thread:$0]  %s12_s8, 256, %s14_s10, [#allocation3], %s135_s11, %s135_s11, %s136_s12  }
   0x4   :  { %132 = dma.done.wait [#allocation3], 256  }
   0x5   :  { %133 = vsyncadd [#allocation3], 4294967040  ;;  %v24_v0 = vld [vmem:[#allocation2] sm:$0xff]  ;;  %v25_v1 = vld [vmem:[#allocation2 + $0x8] sm:$0xff]  ;;  %vm90_vm0 = vcmask 64512  }
   0x6   :  { %26 = vxpose.xlu0.b32.start.end [1/1] (short) (narrow) %v24_v0, 32 }
  0x26   :  { %58 = vxpose.xlu0.b32.start.end [1/1] (short) (narrow) %v25_v1, 32 }
  0xaa   :  { %v42_v2 = vpop.trf.xlu0 }
  0xab   :  { %91 = vst.msk [vmem:[%s183_s1] sm:$0xff] %vm90_vm0, %v42_v2 }
  0xb2   :  { %v43_v3 = vpop.trf.xlu0 }
  0xb3   :  { %92 = vst.msk [vmem:[%s183_s1 + $0x8] sm:$0xff] %vm90_vm0, %v43_v3 }
  0xba   :  { %v44_v4 = vpop.trf.xlu0 }
  0xbb   :  { %93 = vst.msk [vmem:[%s183_s1 + $0x10] sm:$0xff] %vm90_vm0, %v44_v4 }
  0xc2   :  { %v45_v5 = vpop.trf.xlu0 }
  0xc3   :  { %94 = vst.msk [vmem:[%s183_s1 + $0x18] sm:$0xff] %vm90_vm0, %v45_v5 }
  0xca   :  { %v74_v6 = vpop.trf.xlu0 }
  0xcb   :  { %95 = vst.msk [vmem:[%s183_s1 + $0x20] sm:$0xff] %vm90_vm0, %v74_v6 }
  0xd2   :  { %v75_v7 = vpop.trf.xlu0 }
  0xd3   :  { %96 = vst.msk [vmem:[%s183_s1 + $0x28] sm:$0xff] %vm90_vm0, %v75_v7 }
  0xda   :  { %v76_v8 = vpop.trf.xlu0 }
  0xdb   :  { %97 = vst.msk [vmem:[%s183_s1 + $0x30] sm:$0xff] %vm90_vm0, %v76_v8 }
  0xe2   :  { %v77_v9 = vpop.trf.xlu0 }
  0xe3   :  { %98 = vst.msk [vmem:[%s183_s1 + $0x38] sm:$0xff] %vm90_vm0, %v77_v9 }
  0xe4   :  { %103 = vsyncpa [#allocation3], 1 }

</bundles_post_ra>
